<compile_context>
chip_gen: v5e
topology: v5e:2x2
jax: 0.10.0
libtpu: 0.0.40
codegen_flags: <defaults>
</compile_context>

<pallas_src>
import functools

import jax
import jax.numpy as jnp
from jax import lax
from jax.experimental import pallas as pl
from jax.experimental.pallas import tpu as pltpu


def _round_up(x, m):
    return ((x + m - 1) // m) * m


def _gru_fc_kernel(x_ref, wi_ref, wh_ref, bi_ref, bhn_ref, fcw_ref, fcb_ref,
                   out_ref, gi_ref, h_ref, hcarry_ref, *, t_chunk, bps, hp):
    """Fused GRU recurrence + Linear head for one (batch-shard, seq-chunk) tile.

    x_ref      : (T*BPs, I)     time-major chunk of the (padded) input
    wi_ref     : (I, 3*HP)      input->gates weights, gate-major padded [r|z|n]
    wh_ref     : (HP, 3*HP)     hidden->gates weights, gate-major padded (f32)
    bi_ref     : (1, 3*HP)      folded biases: [bi_r+bh_r | bi_z+bh_z | bi_n]
    bhn_ref    : (1, HP)        b_hh_n (must be applied under r*)
    fcw_ref    : (HP, OP)       fc weight (transposed, padded)
    fcb_ref    : (1, OP)        fc bias (padded)
    out_ref    : (T*BPs, OP)    fc(GRU output) for this chunk, lane-dense
    gi_ref     : VMEM (T*BPs, 3*HP)  scratch: precomputed input gates
    h_ref      : VMEM (T*BPs, HP)    scratch: hidden states for the FC head
    hcarry_ref : VMEM (BPs, HP)      hidden state carried across seq chunks
    """
    # Reset the hidden-state carry at the first sequence chunk of this shard.
    @pl.when(pl.program_id(1) == 0)
    def _():
        hcarry_ref[...] = jnp.zeros_like(hcarry_ref)

    # ---- Phase 1: batched input projection for the whole chunk (one matmul).
    gi_ref[...] = (
        jnp.dot(x_ref[...], wi_ref[...], preferred_element_type=jnp.float32)
        + bi_ref[...]
    )

    wh = wh_ref[...]                                              # (HP, 3HP) f32
    # Hoisted: broadcast b_hh_n once (JAX does not CSE broadcast_in_dim).
    bhn_b = jnp.broadcast_to(bhn_ref[...], (bps, hp))             # (BPs, HP)

    # ---- Phase 2: serial GRU recurrence; only h @ W_hh stays on the chain.
    def step(t, h):
        row = pl.multiple_of(t * bps, 8)
        gi_t = gi_ref[pl.ds(row, bps), :]                         # (BPs, 3HP)
        gh = jnp.dot(h, wh, preferred_element_type=jnp.float32)   # (BPs, 3HP)
        # Lane-aligned (128-wide) gate blocks -> full-vreg slices.
        r = jax.nn.sigmoid(gi_t[:, 0:hp] + gh[:, 0:hp])
        z = jax.nn.sigmoid(gi_t[:, hp:2 * hp] + gh[:, hp:2 * hp])
        n = jnp.tanh(gi_t[:, 2 * hp:3 * hp] + r * (gh[:, 2 * hp:3 * hp] + bhn_b))
        h_new = n + z * (h - n)                                   # = (1-z)*n + z*h
        h_ref[pl.ds(row, bps), :] = h_new
        return h_new

    unroll = t_chunk if t_chunk <= 32 else 8
    h_last = lax.fori_loop(0, t_chunk, step, hcarry_ref[...], unroll=unroll)
    hcarry_ref[...] = h_last

    # ---- Phase 3: batched FC head + a single lane-dense store.
    hs = h_ref[...].astype(fcw_ref.dtype)
    out_ref[...] = (
        jnp.dot(hs, fcw_ref[...], preferred_element_type=jnp.float32)
        + fcb_ref[...]
    ).astype(out_ref.dtype)


def rnn_classifier_forward(x, raw_params, *, seq_chunk=64, batch_shards=1,
                           matmul_dtype=jnp.bfloat16):
    """x: (batch, input_size, seq_len); returns (seq_len, batch, output_size).

    seq_chunk    : timesteps per grid step (caps VMEM, enables pipelining).
    batch_shards : split batch over this many "parallel" grid slots
                   (use 2 on v7x to occupy both TensorCores; 1 on v5e/v6e).
    matmul_dtype : operand dtype of the two big batched matmuls (bf16 gives
                   ~3x MXU throughput; recurrence stays f32 either way).
    """
    w_ih, w_hh, b_ih, b_hh, fc_w, fc_b = raw_params
    B, I, S = x.shape
    H = w_hh.shape[1]
    O = fc_w.shape[0]
    f32 = jnp.float32
    mmd = matmul_dtype

    NS = max(int(batch_shards), 1)
    BPs = _round_up(-(-B // NS), 8)        # sublane-padded batch per shard
    BP = NS * BPs
    HP = _round_up(H, 128)                 # lane tile per gate
    OP = _round_up(O, 128)                 # lane-dense output slab
    T = max(1, min(int(seq_chunk), S))     # timesteps per chunk
    SP = _round_up(S, T)
    C = SP // T

    # input.permute(2, 0, 1): (B, I, S) -> (S, B, I); pad time & batch; shard.
    x_sbi = jnp.transpose(x, (2, 0, 1))
    x_pad = jnp.zeros((SP, BP, I), mmd).at[:S, :B, :].set(x_sbi.astype(mmd))
    x_sh = (x_pad.reshape(SP, NS, BPs, I)
                 .transpose(1, 0, 2, 3)
                 .reshape(NS, SP * BPs, I))

    # Gate-major padded weights: each gate gets its own 128-lane block.
    def gate_pad_cols(w_t):  # (rows, 3H), gate order [r|z|n] -> (rows, 3*HP)
        out = jnp.zeros((w_t.shape[0], 3 * HP), f32)
        for g in range(3):
            out = out.at[:, g * HP:g * HP + H].set(w_t[:, g * H:(g + 1) * H])
        return out

    wi_p = gate_pad_cols(w_ih.T.astype(f32)).astype(mmd)             # (I, 3HP)
    wh_p = jnp.zeros((HP, 3 * HP), f32).at[:H, :].set(
        gate_pad_cols(w_hh.T.astype(f32)))                           # (HP, 3HP)

    # Fold r/z biases and bi_n into the batched projection; keep only bh_n
    # (which sits under r*) for the per-step add.
    bi_p = jnp.zeros((1, 3 * HP), f32)
    bi_p = bi_p.at[0, 0 * HP:0 * HP + H].set(b_ih[0:H] + b_hh[0:H])
    bi_p = bi_p.at[0, 1 * HP:1 * HP + H].set(b_ih[H:2 * H] + b_hh[H:2 * H])
    bi_p = bi_p.at[0, 2 * HP:2 * HP + H].set(b_ih[2 * H:3 * H])
    bhn_p = jnp.zeros((1, HP), f32).at[0, :H].set(b_hh[2 * H:3 * H])

    fcw_p = jnp.zeros((HP, OP), f32).at[:H, :O].set(fc_w.T.astype(f32)).astype(mmd)
    fcb_p = jnp.zeros((1, OP), f32).at[0, :O].set(fc_b.astype(f32))

    # VMEM budget sized to the chunked footprint (scratch + 2x-buffered I/O
    # blocks + weights), with headroom.
    mmb = jnp.dtype(mmd).itemsize
    scratch_b = (T * BPs * 3 * HP + T * BPs * HP + BPs * HP) * 4
    io_b = 2 * T * BPs * I * mmb + 2 * T * BPs * OP * 4
    w_b = 2 * ((I * 3 * HP + HP * OP) * mmb
               + (HP * 3 * HP + 3 * HP + HP + OP) * 4)
    vmem_limit = int(min(max(2 * (scratch_b + io_b + w_b) + (4 << 20),
                             32 << 20), 112 << 20))

    kernel = functools.partial(_gru_fc_kernel, t_chunk=T, bps=BPs, hp=HP)
    const = lambda s, c: (0, 0)
    out_sh = pl.pallas_call(
        kernel,
        out_shape=jax.ShapeDtypeStruct((NS, SP * BPs, OP), f32),
        grid_spec=pltpu.PrefetchScalarGridSpec(
            num_scalar_prefetch=0,
            grid=(NS, C),
            in_specs=[
                pl.BlockSpec((None, T * BPs, I), lambda s, c: (s, c, 0)),
                pl.BlockSpec((I, 3 * HP), const),
                pl.BlockSpec((HP, 3 * HP), const),
                pl.BlockSpec((1, 3 * HP), const),
                pl.BlockSpec((1, HP), const),
                pl.BlockSpec((HP, OP), const),
                pl.BlockSpec((1, OP), const),
            ],
            out_specs=pl.BlockSpec((None, T * BPs, OP), lambda s, c: (s, c, 0)),
            scratch_shapes=[
                pltpu.VMEM((T * BPs, 3 * HP), f32),   # input gates (one chunk)
                pltpu.VMEM((T * BPs, HP), f32),       # hidden states (one chunk)
                pltpu.VMEM((BPs, HP), f32),           # h carried across chunks
            ],
        ),
        compiler_params=pltpu.CompilerParams(
            dimension_semantics=("parallel", "arbitrary"),
            vmem_limit_bytes=vmem_limit),
    )(x_sh, wi_p, wh_p, bi_p, bhn_p, fcw_p, fcb_p)

    # Un-shard / un-pad: (NS, SP*BPs, OP) -> (S, B, O), matching fc(gru_output).
    out = (out_sh.reshape(NS, SP, BPs, OP)
                 .transpose(1, 0, 2, 3)
                 .reshape(SP, BP, OP))
    return out[:S, :B, :O]


def init_params(key, input_size, hidden_size, output_size):
    """PyTorch-layout params with U(-1/sqrt(H), 1/sqrt(H)) init."""
    ks = jax.random.split(key, 6)
    bound = 1.0 / jnp.sqrt(jnp.float32(hidden_size))
    u = lambda k, shape: jax.random.uniform(
        k, shape, dtype=jnp.float32, minval=-bound, maxval=bound)
    w_ih = u(ks[0], (3 * hidden_size, input_size))    # gate order [r|z|n]
    w_hh = u(ks[1], (3 * hidden_size, hidden_size))
    b_ih = u(ks[2], (3 * hidden_size,))
    b_hh = u(ks[3], (3 * hidden_size,))
    fc_w = u(ks[4], (output_size, hidden_size))
    fc_b = u(ks[5], (output_size,))
    return (w_ih, w_hh, b_ih, b_hh, fc_w, fc_b)


def reference_forward(x, raw_params):
    """Pure-JAX reference of the same forward pass (unpadded, f32)."""
    w_ih, w_hh, b_ih, b_hh, fc_w, fc_b = raw_params
    H = w_hh.shape[1]
    wi, wh = w_ih.T, w_hh.T
    x_sbi = jnp.transpose(x, (2, 0, 1)).astype(jnp.float32)   # (S, B, I)

    def step(h, x_t):
        gi = x_t @ wi + b_ih
        gh = h @ wh + b_hh
        r = jax.nn.sigmoid(gi[:, :H] + gh[:, :H])
        z = jax.nn.sigmoid(gi[:, H:2 * H] + gh[:, H:2 * H])
        n = jnp.tanh(gi[:, 2 * H:] + r * gh[:, 2 * H:])
        h_new = (1.0 - z) * n + z * h
        return h_new, h_new

    h0 = jnp.zeros((x_sbi.shape[1], H), dtype=jnp.float32)
    _, hs = lax.scan(step, h0, x_sbi)                         # (S, B, H)
    return hs @ fc_w.T + fc_b                                 # (S, B, O)


if __name__ == "__main__":
    batch = 2
    input_size = 16
    seq_len = 8
    hidden_size = 32
    output_size = 8

    key = jax.random.PRNGKey(0)
    k_x, k_p = jax.random.split(key)

    x = jax.random.normal(k_x, (batch, input_size, seq_len), dtype=jnp.float32)
    params = init_params(k_p, input_size, hidden_size, output_size)
    ref = reference_forward(x, params)

    # Config A: f32 matmuls, chunked sequence (exercises the cross-chunk
    # hidden-state carry and sequence padding), single batch shard.
    fwd_a = jax.jit(functools.partial(
        rnn_classifier_forward, seq_chunk=3, batch_shards=1,
        matmul_dtype=jnp.float32))
    out_a = jax.block_until_ready(fwd_a(x, params))
    assert out_a.shape == (seq_len, batch, output_size), out_a.shape
    assert jnp.allclose(out_a, ref, atol=1e-4, rtol=1e-4), "f32 mismatch vs ref"

    # Config B: bf16 matmul operands (f32 accumulation) + 2 batch shards
    # (the v7x megacore "parallel" path).
    fwd_b = jax.jit(functools.partial(
        rnn_classifier_forward, seq_chunk=8, batch_shards=2,
        matmul_dtype=jnp.bfloat16))
    out_b = jax.block_until_ready(fwd_b(x, params))
    assert out_b.shape == (seq_len, batch, output_size), out_b.shape
    assert jnp.allclose(out_b, ref, atol=3e-2, rtol=3e-2), "bf16 mismatch vs ref"

    print("KERNEL_OK")
</pallas_src>

<mosaic_0001>
module attributes {stable_mosaic.version = 11 : i64} {
  func.func @_gru_fc_kernel(%arg0: i32, %arg1: i32, %arg2: memref<1x24x16xf32, #tpu.memory_space<vmem>>, %arg3: memref<16x384xf32, #tpu.memory_space<vmem>>, %arg4: memref<128x384xf32, #tpu.memory_space<vmem>>, %arg5: memref<1x384xf32, #tpu.memory_space<vmem>>, %arg6: memref<1x128xf32, #tpu.memory_space<vmem>>, %arg7: memref<128x128xf32, #tpu.memory_space<vmem>>, %arg8: memref<1x128xf32, #tpu.memory_space<vmem>>, %arg9: memref<1x24x128xf32, #tpu.memory_space<vmem>>, %arg10: memref<24x384xf32, #tpu.memory_space<vmem>>, %arg11: memref<24x128xf32, #tpu.memory_space<vmem>>, %arg12: memref<8x128xf32, #tpu.memory_space<vmem>>) attributes {dimension_semantics = [#tpu.dimension_semantics<parallel>, #tpu.dimension_semantics<arbitrary>], iteration_bounds = array<i64: 1, 3>, scalar_prefetch = 0 : i64, scratch_operands = 3 : i64, tpu.core_type = #tpu.core_type<tc>, window_params = [{transform_indices = @transform_0, window_bounds = array<i64: 1, 24, 16>}, {pipeline_mode = #tpu.pipeline_mode<synchronous>, transform_indices = @transform_1, window_bounds = array<i64: 16, 384>}, {pipeline_mode = #tpu.pipeline_mode<synchronous>, transform_indices = @transform_2, window_bounds = array<i64: 128, 384>}, {pipeline_mode = #tpu.pipeline_mode<synchronous>, transform_indices = @transform_3, window_bounds = array<i64: 1, 384>}, {pipeline_mode = #tpu.pipeline_mode<synchronous>, transform_indices = @transform_4, window_bounds = array<i64: 1, 128>}, {pipeline_mode = #tpu.pipeline_mode<synchronous>, transform_indices = @transform_5, window_bounds = array<i64: 128, 128>}, {pipeline_mode = #tpu.pipeline_mode<synchronous>, transform_indices = @transform_6, window_bounds = array<i64: 1, 128>}, {transform_indices = @transform_7, window_bounds = array<i64: 1, 24, 128>}]} {
    %c0_i32 = arith.constant 0 : i32
    %0 = arith.cmpi eq, %arg1, %c0_i32 : i32
    %1 = arith.extui %0 : i1 to i32
    %c0_i32_0 = arith.constant 0 : i32
    %2 = arith.cmpi ne, %1, %c0_i32_0 : i32
    scf.if %2 {
      %cst_45 = arith.constant 0.000000e+00 : f32
      %122 = vector.broadcast %cst_45 : f32 to vector<8x128xf32>
      %c0_46 = arith.constant 0 : index
      %c0_47 = arith.constant 0 : index
      %123 = vector.load %arg12[%c0_46, %c0_47] : memref<8x128xf32, #tpu.memory_space<vmem>>, vector<8x128xf32>
      tpu.vector_store %arg12[%c0_46, %c0_47], %122 {strides = array<i32>} : memref<8x128xf32, #tpu.memory_space<vmem>>, vector<8x128xf32>,
    } else {
    }
    %c0 = arith.constant 0 : index
    %c0_1 = arith.constant 0 : index
    %c0_2 = arith.constant 0 : index
    %3 = vector.load %arg2[%c0, %c0_1, %c0_2] : memref<1x24x16xf32, #tpu.memory_space<vmem>>, vector<1x24x16xf32>
    %4 = vector.shape_cast %3 : vector<1x24x16xf32> to vector<24x16xf32>
    %c0_3 = arith.constant 0 : index
    %c0_4 = arith.constant 0 : index
    %5 = vector.load %arg3[%c0_3, %c0_4] : memref<16x384xf32, #tpu.memory_space<vmem>>, vector<16x384xf32>
    %cst = arith.constant dense<0.000000e+00> : vector<24x384xf32>
    %6 = tpu.matmul %4, %5, %cst {dimension_numbers = #tpu.dot_dimension_numbers<[1], [0], [0], [1], [0, 0, 1, 1], [], []>} : vector<24x16xf32>, vector<16x384xf32>, vector<24x384xf32> -> vector<24x384xf32>
    %c0_5 = arith.constant 0 : index
    %c0_6 = arith.constant 0 : index
    %7 = vector.load %arg5[%c0_5, %c0_6] : memref<1x384xf32, #tpu.memory_space<vmem>>, vector<1x384xf32>
    %8 = vector.broadcast %7 : vector<1x384xf32> to vector<24x384xf32>
    %9 = arith.addf %6, %8 : vector<24x384xf32>
    %c0_7 = arith.constant 0 : index
    %c0_8 = arith.constant 0 : index
    %10 = vector.load %arg10[%c0_7, %c0_8] : memref<24x384xf32, #tpu.memory_space<vmem>>, vector<24x384xf32>
    tpu.vector_store %arg10[%c0_7, %c0_8], %9 {strides = array<i32>} : memref<24x384xf32, #tpu.memory_space<vmem>>, vector<24x384xf32>,
    %c0_9 = arith.constant 0 : index
    %c0_10 = arith.constant 0 : index
    %11 = vector.load %arg4[%c0_9, %c0_10] : memref<128x384xf32, #tpu.memory_space<vmem>>, vector<128x384xf32>
    %c0_11 = arith.constant 0 : index
    %c0_12 = arith.constant 0 : index
    %12 = vector.load %arg6[%c0_11, %c0_12] : memref<1x128xf32, #tpu.memory_space<vmem>>, vector<1x128xf32>
    %13 = vector.shape_cast %12 : vector<1x128xf32> to vector<1x128xf32>
    %14 = vector.broadcast %13 : vector<1x128xf32> to vector<8x128xf32>
    %c0_13 = arith.constant 0 : index
    %c0_14 = arith.constant 0 : index
    %15 = vector.load %arg12[%c0_13, %c0_14] : memref<8x128xf32, #tpu.memory_space<vmem>>, vector<8x128xf32>
    %c0_i32_15 = arith.constant 0 : i32
    %c8_i32 = arith.constant 8 : i32
    %16 = arith.muli %c0_i32_15, %c8_i32 : i32
    %17 = tpu.assume_multiple %16, 8 : i32
    %18 = arith.index_cast %17 : i32 to index
    %c0_16 = arith.constant 0 : index
    %19 = vector.load %arg10[%18, %c0_16] : memref<24x384xf32, #tpu.memory_space<vmem>>, vector<8x384xf32>
    %cst_17 = arith.constant dense<0.000000e+00> : vector<8x384xf32>
    %20 = tpu.matmul %15, %11, %cst_17 {dimension_numbers = #tpu.dot_dimension_numbers<[1], [0], [0], [1], [0, 0, 1, 1], [], []>} : vector<8x128xf32>, vector<128x384xf32>, vector<8x384xf32> -> vector<8x384xf32>
    %21 = vector.extract_strided_slice %19 {offsets = [0, 0], sizes = [8, 128], strides = [1, 1]} : vector<8x384xf32> to vector<8x128xf32>
    %22 = vector.extract_strided_slice %20 {offsets = [0, 0], sizes = [8, 128], strides = [1, 1]} : vector<8x384xf32> to vector<8x128xf32>
    %23 = arith.addf %21, %22 : vector<8x128xf32>
    %24 = arith.negf %23 : vector<8x128xf32>
    %25 = math.exp %24 : vector<8x128xf32>
    %cst_18 = arith.constant 1.000000e+00 : f32
    %26 = vector.broadcast %cst_18 : f32 to vector<8x128xf32>
    %27 = arith.addf %26, %25 : vector<8x128xf32>
    %28 = arith.divf %26, %27 : vector<8x128xf32>
    %29 = vector.extract_strided_slice %19 {offsets = [0, 128], sizes = [8, 128], strides = [1, 1]} : vector<8x384xf32> to vector<8x128xf32>
    %30 = vector.extract_strided_slice %20 {offsets = [0, 128], sizes = [8, 128], strides = [1, 1]} : vector<8x384xf32> to vector<8x128xf32>
    %31 = arith.addf %29, %30 : vector<8x128xf32>
    %32 = arith.negf %31 : vector<8x128xf32>
    %33 = math.exp %32 : vector<8x128xf32>
    %cst_19 = arith.constant 1.000000e+00 : f32
    %34 = vector.broadcast %cst_19 : f32 to vector<8x128xf32>
    %35 = arith.addf %34, %33 : vector<8x128xf32>
    %36 = arith.divf %34, %35 : vector<8x128xf32>
    %37 = vector.extract_strided_slice %19 {offsets = [0, 256], sizes = [8, 128], strides = [1, 1]} : vector<8x384xf32> to vector<8x128xf32>
    %38 = vector.extract_strided_slice %20 {offsets = [0, 256], sizes = [8, 128], strides = [1, 1]} : vector<8x384xf32> to vector<8x128xf32>
    %39 = arith.addf %38, %14 : vector<8x128xf32>
    %40 = arith.mulf %28, %39 : vector<8x128xf32>
    %41 = arith.addf %37, %40 : vector<8x128xf32>
    %42 = math.tanh %41 : vector<8x128xf32>
    %43 = arith.subf %15, %42 : vector<8x128xf32>
    %44 = arith.mulf %36, %43 : vector<8x128xf32>
    %45 = arith.addf %42, %44 : vector<8x128xf32>
    %46 = arith.index_cast %17 : i32 to index
    %c0_20 = arith.constant 0 : index
    %47 = vector.load %arg11[%46, %c0_20] : memref<24x128xf32, #tpu.memory_space<vmem>>, vector<8x128xf32>
    tpu.vector_store %arg11[%46, %c0_20], %45 {strides = array<i32>} : memref<24x128xf32, #tpu.memory_space<vmem>>, vector<8x128xf32>,
    %c1_i32 = arith.constant 1 : i32
    %c8_i32_21 = arith.constant 8 : i32
    %48 = arith.muli %c1_i32, %c8_i32_21 : i32
    %49 = tpu.assume_multiple %48, 8 : i32
    %50 = arith.index_cast %49 : i32 to index
    %c0_22 = arith.constant 0 : index
    %51 = vector.load %arg10[%50, %c0_22] : memref<24x384xf32, #tpu.memory_space<vmem>>, vector<8x384xf32>
    %cst_23 = arith.constant dense<0.000000e+00> : vector<8x384xf32>
    %52 = tpu.matmul %45, %11, %cst_23 {dimension_numbers = #tpu.dot_dimension_numbers<[1], [0], [0], [1], [0, 0, 1, 1], [], []>} : vector<8x128xf32>, vector<128x384xf32>, vector<8x384xf32> -> vector<8x384xf32>
    %53 = vector.extract_strided_slice %51 {offsets = [0, 0], sizes = [8, 128], strides = [1, 1]} : vector<8x384xf32> to vector<8x128xf32>
    %54 = vector.extract_strided_slice %52 {offsets = [0, 0], sizes = [8, 128], strides = [1, 1]} : vector<8x384xf32> to vector<8x128xf32>
    %55 = arith.addf %53, %54 : vector<8x128xf32>
    %56 = arith.negf %55 : vector<8x128xf32>
    %57 = math.exp %56 : vector<8x128xf32>
    %cst_24 = arith.constant 1.000000e+00 : f32
    %58 = vector.broadcast %cst_24 : f32 to vector<8x128xf32>
    %59 = arith.addf %58, %57 : vector<8x128xf32>
    %60 = arith.divf %58, %59 : vector<8x128xf32>
    %61 = vector.extract_strided_slice %51 {offsets = [0, 128], sizes = [8, 128], strides = [1, 1]} : vector<8x384xf32> to vector<8x128xf32>
    %62 = vector.extract_strided_slice %52 {offsets = [0, 128], sizes = [8, 128], strides = [1, 1]} : vector<8x384xf32> to vector<8x128xf32>
    %63 = arith.addf %61, %62 : vector<8x128xf32>
    %64 = arith.negf %63 : vector<8x128xf32>
    %65 = math.exp %64 : vector<8x128xf32>
    %cst_25 = arith.constant 1.000000e+00 : f32
    %66 = vector.broadcast %cst_25 : f32 to vector<8x128xf32>
    %67 = arith.addf %66, %65 : vector<8x128xf32>
    %68 = arith.divf %66, %67 : vector<8x128xf32>
    %69 = vector.extract_strided_slice %51 {offsets = [0, 256], sizes = [8, 128], strides = [1, 1]} : vector<8x384xf32> to vector<8x128xf32>
    %70 = vector.extract_strided_slice %52 {offsets = [0, 256], sizes = [8, 128], strides = [1, 1]} : vector<8x384xf32> to vector<8x128xf32>
    %71 = arith.addf %70, %14 : vector<8x128xf32>
    %72 = arith.mulf %60, %71 : vector<8x128xf32>
    %73 = arith.addf %69, %72 : vector<8x128xf32>
    %74 = math.tanh %73 : vector<8x128xf32>
    %75 = arith.subf %45, %74 : vector<8x128xf32>
    %76 = arith.mulf %68, %75 : vector<8x128xf32>
    %77 = arith.addf %74, %76 : vector<8x128xf32>
    %78 = arith.index_cast %49 : i32 to index
    %c0_26 = arith.constant 0 : index
    %79 = vector.load %arg11[%78, %c0_26] : memref<24x128xf32, #tpu.memory_space<vmem>>, vector<8x128xf32>
    tpu.vector_store %arg11[%78, %c0_26], %77 {strides = array<i32>} : memref<24x128xf32, #tpu.memory_space<vmem>>, vector<8x128xf32>,
    %c2_i32 = arith.constant 2 : i32
    %c8_i32_27 = arith.constant 8 : i32
    %80 = arith.muli %c2_i32, %c8_i32_27 : i32
    %81 = tpu.assume_multiple %80, 8 : i32
    %82 = arith.index_cast %81 : i32 to index
    %c0_28 = arith.constant 0 : index
    %83 = vector.load %arg10[%82, %c0_28] : memref<24x384xf32, #tpu.memory_space<vmem>>, vector<8x384xf32>
    %cst_29 = arith.constant dense<0.000000e+00> : vector<8x384xf32>
    %84 = tpu.matmul %77, %11, %cst_29 {dimension_numbers = #tpu.dot_dimension_numbers<[1], [0], [0], [1], [0, 0, 1, 1], [], []>} : vector<8x128xf32>, vector<128x384xf32>, vector<8x384xf32> -> vector<8x384xf32>
    %85 = vector.extract_strided_slice %83 {offsets = [0, 0], sizes = [8, 128], strides = [1, 1]} : vector<8x384xf32> to vector<8x128xf32>
    %86 = vector.extract_strided_slice %84 {offsets = [0, 0], sizes = [8, 128], strides = [1, 1]} : vector<8x384xf32> to vector<8x128xf32>
    %87 = arith.addf %85, %86 : vector<8x128xf32>
    %88 = arith.negf %87 : vector<8x128xf32>
    %89 = math.exp %88 : vector<8x128xf32>
    %cst_30 = arith.constant 1.000000e+00 : f32
    %90 = vector.broadcast %cst_30 : f32 to vector<8x128xf32>
    %91 = arith.addf %90, %89 : vector<8x128xf32>
    %92 = arith.divf %90, %91 : vector<8x128xf32>
    %93 = vector.extract_strided_slice %83 {offsets = [0, 128], sizes = [8, 128], strides = [1, 1]} : vector<8x384xf32> to vector<8x128xf32>
    %94 = vector.extract_strided_slice %84 {offsets = [0, 128], sizes = [8, 128], strides = [1, 1]} : vector<8x384xf32> to vector<8x128xf32>
    %95 = arith.addf %93, %94 : vector<8x128xf32>
    %96 = arith.negf %95 : vector<8x128xf32>
    %97 = math.exp %96 : vector<8x128xf32>
    %cst_31 = arith.constant 1.000000e+00 : f32
    %98 = vector.broadcast %cst_31 : f32 to vector<8x128xf32>
    %99 = arith.addf %98, %97 : vector<8x128xf32>
    %100 = arith.divf %98, %99 : vector<8x128xf32>
    %101 = vector.extract_strided_slice %83 {offsets = [0, 256], sizes = [8, 128], strides = [1, 1]} : vector<8x384xf32> to vector<8x128xf32>
    %102 = vector.extract_strided_slice %84 {offsets = [0, 256], sizes = [8, 128], strides = [1, 1]} : vector<8x384xf32> to vector<8x128xf32>
    %103 = arith.addf %102, %14 : vector<8x128xf32>
    %104 = arith.mulf %92, %103 : vector<8x128xf32>
    %105 = arith.addf %101, %104 : vector<8x128xf32>
    %106 = math.tanh %105 : vector<8x128xf32>
    %107 = arith.subf %77, %106 : vector<8x128xf32>
    %108 = arith.mulf %100, %107 : vector<8x128xf32>
    %109 = arith.addf %106, %108 : vector<8x128xf32>
    %110 = arith.index_cast %81 : i32 to index
    %c0_32 = arith.constant 0 : index
    %111 = vector.load %arg11[%110, %c0_32] : memref<24x128xf32, #tpu.memory_space<vmem>>, vector<8x128xf32>
    tpu.vector_store %arg11[%110, %c0_32], %109 {strides = array<i32>} : memref<24x128xf32, #tpu.memory_space<vmem>>, vector<8x128xf32>,
    %c3_i32 = arith.constant 3 : i32
    %c0_33 = arith.constant 0 : index
    %c0_34 = arith.constant 0 : index
    %112 = vector.load %arg12[%c0_33, %c0_34] : memref<8x128xf32, #tpu.memory_space<vmem>>, vector<8x128xf32>
    tpu.vector_store %arg12[%c0_33, %c0_34], %109 {strides = array<i32>} : memref<8x128xf32, #tpu.memory_space<vmem>>, vector<8x128xf32>,
    %c0_35 = arith.constant 0 : index
    %c0_36 = arith.constant 0 : index
    %113 = vector.load %arg11[%c0_35, %c0_36] : memref<24x128xf32, #tpu.memory_space<vmem>>, vector<24x128xf32>
    %c0_37 = arith.constant 0 : index
    %c0_38 = arith.constant 0 : index
    %114 = vector.load %arg7[%c0_37, %c0_38] : memref<128x128xf32, #tpu.memory_space<vmem>>, vector<128x128xf32>
    %cst_39 = arith.constant dense<0.000000e+00> : vector<24x128xf32>
    %115 = tpu.matmul %113, %114, %cst_39 {dimension_numbers = #tpu.dot_dimension_numbers<[1], [0], [0], [1], [0, 0, 1, 1], [], []>} : vector<24x128xf32>, vector<128x128xf32>, vector<24x128xf32> -> vector<24x128xf32>
    %c0_40 = arith.constant 0 : index
    %c0_41 = arith.constant 0 : index
    %116 = vector.load %arg8[%c0_40, %c0_41] : memref<1x128xf32, #tpu.memory_space<vmem>>, vector<1x128xf32>
    %117 = vector.broadcast %116 : vector<1x128xf32> to vector<24x128xf32>
    %118 = arith.addf %115, %117 : vector<24x128xf32>
    %c0_42 = arith.constant 0 : index
    %c0_43 = arith.constant 0 : index
    %c0_44 = arith.constant 0 : index
    %119 = vector.load %arg9[%c0_42, %c0_43, %c0_44] : memref<1x24x128xf32, #tpu.memory_space<vmem>>, vector<1x24x128xf32>
    %120 = vector.shape_cast %119 : vector<1x24x128xf32> to vector<24x128xf32>
    %121 = vector.shape_cast %118 : vector<24x128xf32> to vector<1x24x128xf32>
    tpu.vector_store %arg9[%c0_42, %c0_43, %c0_44], %121 {strides = array<i32>} : memref<1x24x128xf32, #tpu.memory_space<vmem>>, vector<1x24x128xf32>,
    return
  }
  func.func @transform_0(%arg0: i32, %arg1: i32) -> (i32, i32, i32) {
    %c0_i32 = arith.constant 0 : i32
    %c0_i32_0 = arith.constant 0 : i32
    return %arg0, %arg1, %c0_i32 : i32, i32, i32
  }
  func.func @transform_1(%arg0: i32, %arg1: i32) -> (i32, i32) {
    %c0_i32 = arith.constant 0 : i32
    %c0_i32_0 = arith.constant 0 : i32
    %c0_i32_1 = arith.constant 0 : i32
    return %c0_i32, %c0_i32_0 : i32, i32
  }
  func.func @transform_2(%arg0: i32, %arg1: i32) -> (i32, i32) {
    %c0_i32 = arith.constant 0 : i32
    %c0_i32_0 = arith.constant 0 : i32
    %c0_i32_1 = arith.constant 0 : i32
    return %c0_i32, %c0_i32_0 : i32, i32
  }
  func.func @transform_3(%arg0: i32, %arg1: i32) -> (i32, i32) {
    %c0_i32 = arith.constant 0 : i32
    %c0_i32_0 = arith.constant 0 : i32
    %c0_i32_1 = arith.constant 0 : i32
    return %c0_i32, %c0_i32_0 : i32, i32
  }
  func.func @transform_4(%arg0: i32, %arg1: i32) -> (i32, i32) {
    %c0_i32 = arith.constant 0 : i32
    %c0_i32_0 = arith.constant 0 : i32
    %c0_i32_1 = arith.constant 0 : i32
    return %c0_i32, %c0_i32_0 : i32, i32
  }
  func.func @transform_5(%arg0: i32, %arg1: i32) -> (i32, i32) {
    %c0_i32 = arith.constant 0 : i32
    %c0_i32_0 = arith.constant 0 : i32
    %c0_i32_1 = arith.constant 0 : i32
    return %c0_i32, %c0_i32_0 : i32, i32
  }
  func.func @transform_6(%arg0: i32, %arg1: i32) -> (i32, i32) {
    %c0_i32 = arith.constant 0 : i32
    %c0_i32_0 = arith.constant 0 : i32
    %c0_i32_1 = arith.constant 0 : i32
    return %c0_i32, %c0_i32_0 : i32, i32
  }
  func.func @transform_7(%arg0: i32, %arg1: i32) -> (i32, i32, i32) {
    %c0_i32 = arith.constant 0 : i32
    %c0_i32_0 = arith.constant 0 : i32
    return %arg0, %arg1, %c0_i32 : i32, i32, i32
  }
}

</mosaic_0001>

<bundles_post_ra>
// kernel: rnn_classifier_forward.1
= control target key start
LH: loop header
LB: loop body
LE: loop exit
PB: predicated region body
PF: predicated region fallthrough
CT: control target
= control target key end

     0   :  { %s1123_s24 = smov 0   ;;  %s1125_s25 = smov 0   ;;  %s1699_s0 = inlined_call_operand.vmem [shape: f32[1,72,16], index: 0, kind: input, shape index: {}]   ;;  %s1700_s1 = inlined_call_operand.vmem [shape: f32[16,384], index: 1, kind: input, shape index: {}]   ;;  %s1701_s2 = inlined_call_operand.vmem [shape: f32[128,384], index: 2, kind: input, shape index: {}]   ;;  %s1702_s3 = inlined_call_operand.vmem [shape: f32[1,384], index: 3, kind: input, shape index: {}]   ;;  %s1703_s4 = inlined_call_operand.vmem [shape: f32[1,128], index: 4, kind: input, shape index: {}]   ;;  %s1704_s5 = inlined_call_operand.vmem [shape: f32[128,128], index: 5, kind: input, shape index: {}]   ;;  %s1705_s6 = inlined_call_operand.vmem [shape: f32[1,128], index: 6, kind: input, shape index: {}]   ;;  %s1706_s7 = inlined_call_operand.vmem [shape: f32[1,72,128], index: 7, kind: output, shape index: {}]  }
   0x1   :  { %s1127_s26 = smov 0  }
   0x2 LB: > { %s26_s27 = sadd.s32 1, %s1076_s25  ;;  %p980_p0 = scmp.ge.s32.totalorder %s1080_s26, 1  ;;  %s1080_s26 = sphi %s1127_s26, %s17_s26   ;;  %s1076_s25 = sphi %s1125_s25, %s1708_s25   ;;  %s1072_s24 = sphi %s1123_s24, %s1707_s24  }
   0x3   : > { %p27_p1 = scmp.ge.s32.totalorder %s26_s27, 3  ;;  %p258_p2 = scmp.lt.s32.totalorder %s1080_s26, 4 }
   0x5   : > { %s1710_s27 = smov (%p27_p1, %s26_s27), 0  ;;  %p259_p3 = pnand %p980_p0, %p258_p2 }
   0x6   : > { %s298_s28 = smul.u32 (!%p259_p3), 3, %s1072_s24  ;;  %p983_p5 = scmp.ne.s32.totalorder (!%p259_p3), %s1072_s24, 0 }
   0x7   : > { %262 = sbr.rel (%p259_p3) target bundleno = 711 (0x2c7), region = 48 }
   0x8   : > { %p301_p4 = scmp.lt.s32.totalorder (!%p259_p3), %s298_s28, 8 }
   0xc   : > { %s1712_s28 = smov (!%p301_p4, %s298_s28), 8  ;;  %321 = sbr.rel (%p983_p5) target bundleno = 19 (0x13), region = 52 }
   0xd   : > { %s981_s29 = sshll.u32 %s1712_s28, 3 }
   0xe   : > { %s1144_s9 = scalar_lea.vmem %s1699_s0, %s981_s29  ;;  %s1149_s12 = scalar_lea.vmem %s1706_s7, %s981_s29 }
  0x11   : > { %v1082_v0 = vmov 0.0  }
  0x12   : > { %322 = vst [vmem:[#allocation4] sm:$0xff] %v1082_v0 }
  0x13 PF: > { %v1154_v1 = vld [vmem:[%s1701_s2 + $0x168] sm:$0xff]  ;;  %v1159_v2 = vld [vmem:[%s1701_s2 + $0x170] sm:$0xff]  ;;  %v1171_v4 = vld [vmem:[%s1701_s2 + $0x158] sm:$0xff]  ;;  %vm340_vm0 = vcmask 130048  }
  0x14   : > { %v1164_v3 = vld [vmem:[%s1701_s2 + $0x150] sm:$0xff]  ;;  %496 = vmatpush.msra.mxu3 %v1154_v1  ;;  %516 = vmatpush.msra.mxu1 %v1159_v2  ;;  %v1176_v5 = vld [vmem:[%s1701_s2 + $0x138] sm:$0xff]  ;;  %v1181_v6 = vld [vmem:[%s1701_s2 + $0x140] sm:$0xff] }
  0x15   : > { %v1188_v7 = vld [vmem:[%s1701_s2 + $0x120] sm:$0xff]  ;;  %v1193_v8 = vld [vmem:[%s1701_s2 + $0x128] sm:$0xff]  ;;  %v1205_v10 = vld [vmem:[%s1701_s2 + $0x110] sm:$0xff] }
  0x16   : > { %497 = vmatpush.msra.mxu3 %v1164_v3  ;;  %517 = vmatpush.msra.mxu1 %v1171_v4  ;;  %v1200_v9 = vld [vmem:[%s1701_s2 + $0x108] sm:$0xff]  ;;  %v330_v11 = vld [vmem:[%s1700_s1 + $0x20] sm:$0xff]  ;;  %v1215_v12 = vld [vmem:[%s1701_s2 + $0xf0] sm:$0xff] }
  0x17   : > { %v1220_v13 = vld [vmem:[%s1701_s2 + $0xf8] sm:$0xff]  ;;  %390 = vmatpush.msra.mxu2 %v330_v11  ;;  %v327_v14 = vld [vmem:[%s1700_s1 + $0x8] sm:$0xff]  ;;  %v1228_v15 = vld [vmem:[%s1144_s9] sm:$0xff] }
  0x18   : > { %498 = vmatpush.msra.mxu3 %v1176_v5  ;;  %518 = vmatpush.msra.mxu1 %v1181_v6  ;;  %v1233_v16 = vld [vmem:[%s1701_s2 + $0xd8] sm:$0xff]  ;;  %v1238_v17 = vld [vmem:[%s1701_s2 + $0xe0] sm:$0xff]  ;;  %v1250_v19 = vld [vmem:[%s1701_s2 + $0xc8] sm:$0xff] }
  0x19   : > { %391 = vmatpush.msra.mxu2 %v327_v14  ;;  %v1245_v18 = vld [vmem:[%s1701_s2 + $0xc0] sm:$0xff]  ;;  %v329_v20 = vld [vmem:[%s1700_s1 + $0x18] sm:$0xff]  ;;  %v331_v22 = vld [vmem:[%s1700_s1 + $0x28] sm:$0xff] }
  0x1a   : > { %499 = vmatpush.msra.mxu3 %v1188_v7  ;;  %519 = vmatpush.msra.mxu1 %v1193_v8  ;;  %v326_v21 = vld [vmem:[%s1700_s1] sm:$0xff]  ;;  %v1268_v23 = vld [vmem:[%s1701_s2 + $0xa8] sm:$0xff]  ;;  %v1273_v24 = vld [vmem:[%s1701_s2 + $0xb0] sm:$0xff] }
  0x1b   : > { %987 = vmatmul.msk.f32.vlgmr.msra.gmra.mxu2 %vm340_vm0, %v1228_v15  ;;  %364 = vmatpush.msra.mxu0 %v329_v20  ;;  %v1280_v25 = vld [vmem:[%s1701_s2 + $0x90] sm:$0xff]  ;;  %v1285_v26 = vld [vmem:[%s1701_s2 + $0x98] sm:$0xff]  ;;  %v1293_v28 = vld [vmem:[%s1144_s9 + $0x8] sm:$0xff] }
  0x1c   : > { %500 = vmatpush.msra.mxu3 %v1200_v9  ;;  %520 = vmatpush.msra.mxu1 %v1205_v10  ;;  %v328_v27 = vld [vmem:[%s1700_s1 + $0x10] sm:$0xff]  ;;  %v1298_v29 = vld [vmem:[%s1701_s2 + $0x78] sm:$0xff]  ;;  %v1303_v30 = vld [vmem:[%s1701_s2 + $0x80] sm:$0xff] }
  0x1d   : > { %416 = vmatpush.msrb.mxu2 %v331_v22  ;;  %365 = vmatpush.msra.mxu0 %v326_v21  ;;  %v1312_v31 = vld [vmem:[%s1701_s2 + $0x178] sm:$0xff]  ;;  %v1317_v32 = vld [vmem:[%s1701_s2 + $0x60] sm:$0xff]  ;;  %v1322_v33 = vld [vmem:[%s1701_s2 + $0x68] sm:$0xff] }
  0x1e   : > { %501 = vmatpush.msra.mxu3 %v1215_v12  ;;  %521 = vmatpush.msra.mxu1 %v1220_v13  ;;  %v1332_v34 = vld [vmem:[%s1701_s2 + $0x160] sm:$0xff]  ;;  %v1337_v35 = vld [vmem:[%s1701_s2 + $0x48] sm:$0xff]  ;;  %v1342_v36 = vld [vmem:[%s1701_s2 + $0x50] sm:$0xff] }
  0x1f   : > { %984 = vmatmul.msk.f32.vlgmr.msra.gmra.mxu0 %vm340_vm0, %v1228_v15  ;;  %417 = vmatpush.msrb.mxu2 %v328_v27  ;;  %v1351_v37 = vld [vmem:[%s1701_s2 + $0x148] sm:$0xff]  ;;  %v1356_v38 = vld [vmem:[%s1701_s2 + $0x30] sm:$0xff]  ;;  %v1361_v39 = vld [vmem:[%s1701_s2 + $0x38] sm:$0xff] }
  0x20   : > { %502 = vmatpush.msra.mxu3 %v1233_v16  ;;  %522 = vmatpush.msra.mxu1 %v1238_v17  ;;  %v1370_v40 = vld [vmem:[%s1701_s2 + $0x130] sm:$0xff]  ;;  %v1378_v42 = vld [vmem:[%s1701_s2 + $0x18] sm:$0xff]  ;;  %v1383_v43 = vld [vmem:[%s1701_s2 + $0x20] sm:$0xff] }
  0x21   : > { %650 = vmatpush.msrb.mxu0 %v1312_v31  ;;  %610 = vmatpush.msra.mxu2 %v1154_v1  ;;  %v1373_v41 = vld [vmem:[%s1144_s9 + $0x10] sm:$0xff]  ;;  %v1392_v44 = vld [vmem:[%s1701_s2 + $0x118] sm:$0xff]  ;;  %v1397_v45 = vld [vmem:[%s1701_s2] sm:$0xff] }
  0x22   : > { %503 = vmatpush.msra.mxu3 %v1245_v18  ;;  %523 = vmatpush.msra.mxu1 %v1250_v19  ;;  %v1402_v46 = vld [vmem:[%s1701_s2 + $0x8] sm:$0xff]  ;;  %v1409_v47 = vld [vmem:[#allocation4] sm:$0xff]  ;;  %v1432_v50 = vld [vmem:[%s1701_s2 + $0xd0] sm:$0xff] }
  0x23   : > { %988 = vmatmul.msk.f32.gmra.mxu2 %vm340_vm0, %v1293_v28  ;;  %651 = vmatpush.msrb.mxu0 %v1332_v34  ;;  %v1414_v48 = vld [vmem:[%s1701_s2 + $0x100] sm:$0xff]  ;;  %v1425_v49 = vld [vmem:[%s1701_s2 + $0xe8] sm:$0xff]  ;;  %v1441_v51 = vld [vmem:[%s1701_s2 + $0xb8] sm:$0xff] }
  0x24   : > { %504 = vmatpush.msra.mxu3 %v1268_v23  ;;  %524 = vmatpush.msra.mxu1 %v1273_v24  ;;  %v1451_v52 = vld [vmem:[%s1701_s2 + $0xa0] sm:$0xff]  ;;  %v1460_v53 = vld [vmem:[%s1701_s2 + $0x88] sm:$0xff]  ;;  %v1469_v54 = vld [vmem:[%s1701_s2 + $0x70] sm:$0xff] }
  0x25   : > { %652 = vmatpush.msrb.mxu0 %v1351_v37  ;;  %611 = vmatpush.msra.mxu2 %v1164_v3  ;;  %v1478_v55 = vld [vmem:[%s1701_s2 + $0x58] sm:$0xff]  ;;  %v1488_v56 = vld [vmem:[%s1701_s2 + $0x40] sm:$0xff]  ;;  %v1498_v57 = vld [vmem:[%s1701_s2 + $0x28] sm:$0xff] }
  0x26   : > { %505 = vmatpush.msra.mxu3 %v1280_v25  ;;  %525 = vmatpush.msra.mxu1 %v1285_v26  ;;  %v1507_v58 = vld [vmem:[%s1701_s2 + $0x10] sm:$0xff]  ;;  %v1588_v60 = vld [vmem:[%s1702_s3] sm:$0x7]  ;;  %v853_v62 = vld [vmem:[%s1704_s5 + $0x78] sm:$0xff] }
  0x27   : > { %653 = vmatpush.msrb.mxu0 %v1370_v40  ;;  %612 = vmatpush.msra.mxu2 %v1176_v5  ;;  %v335_v61 = vperm.slane %v1588_v60, 1  ;;  %v852_v63 = vld [vmem:[%s1704_s5 + $0x70] sm:$0xff]  ;;  %v849_v14 = vld [vmem:[%s1704_s5 + $0x58] sm:$0xff]  ;;  %v842_v27 = vld [vmem:[%s1704_s5 + $0x20] sm:$0xff] }
  0x28   : > { %506 = vmatpush.msra.mxu3 %v1298_v29  ;;  %526 = vmatpush.msra.mxu1 %v1303_v30  ;;  %v845_v21 = vld [vmem:[%s1704_s5 + $0x38] sm:$0xff]  ;;  %v844_v22 = vld [vmem:[%s1704_s5 + $0x30] sm:$0xff] }
  0x29   : > { %654 = vmatpush.msrb.mxu0 %v1392_v44  ;;  %613 = vmatpush.msra.mxu2 %v1188_v7 }
  0x2a   : > { %507 = vmatpush.msra.mxu3 %v1317_v32  ;;  %527 = vmatpush.msra.mxu1 %v1322_v33 }
  0x2b   : > { %989 = vmatmul.msk.f32.gmra.mxu2 %vm340_vm0, %v1373_v41  ;;  %655 = vmatpush.msrb.mxu0 %v1414_v48 }
  0x2c   : > { %508 = vmatpush.msra.mxu3 %v1337_v35  ;;  %528 = vmatpush.msra.mxu1 %v1342_v36 }
  0x2d   : > { %656 = vmatpush.msrb.mxu0 %v1425_v49  ;;  %614 = vmatpush.msra.mxu2 %v1200_v9 }
  0x2e   : > { %509 = vmatpush.msra.mxu3 %v1356_v38  ;;  %529 = vmatpush.msra.mxu1 %v1361_v39 }
  0x2f   : > { %657 = vmatpush.msrb.mxu0 %v1432_v50  ;;  %615 = vmatpush.msra.mxu2 %v1215_v12 }
  0x30   : > { %510 = vmatpush.msra.mxu3 %v1378_v42  ;;  %530 = vmatpush.msra.mxu1 %v1383_v43 }
  0x31   : > { %658 = vmatpush.msrb.mxu0 %v1441_v51  ;;  %616 = vmatpush.msra.mxu2 %v1233_v16 }
  0x32   : > { %511 = vmatpush.msra.mxu3 %v1397_v45  ;;  %531 = vmatpush.msra.mxu1 %v1402_v46 }
  0x33   : > { %512 = vmatmul.f32.vlgmr.msra.gmra.mxu3 %v1409_v47  ;;  %532 = vmatmul.f32.vlgmr.msra.gmra.mxu1 %v1409_v47 }
  0x34   : > { %536 = vmatpush.msrb.mxu1 %v1312_v31  ;;  %630 = vmatpush.msrb.mxu3 %v1159_v2 }
  0x35   : > { %990 = vmatmul.msk.f32.vlgmr.msrb.gmra.mxu2 %vm340_vm0, %v1228_v15  ;;  %659 = vmatpush.msrb.mxu0 %v1451_v52 }
  0x36   : > { %537 = vmatpush.msrb.mxu1 %v1332_v34  ;;  %631 = vmatpush.msrb.mxu3 %v1171_v4 }
  0x37   : > { %660 = vmatpush.msrb.mxu0 %v1460_v53  ;;  %617 = vmatpush.msra.mxu2 %v1245_v18 }
  0x38   : > { %538 = vmatpush.msrb.mxu1 %v1351_v37  ;;  %632 = vmatpush.msrb.mxu3 %v1181_v6 }
  0x39   : > { %661 = vmatpush.msrb.mxu0 %v1469_v54  ;;  %618 = vmatpush.msra.mxu2 %v1268_v23 }
  0x3a   : > { %539 = vmatpush.msrb.mxu1 %v1370_v40  ;;  %633 = vmatpush.msrb.mxu3 %v1193_v8 }
  0x3b   : > { %985 = vmatmul.msk.f32.gmra.mxu0 %vm340_vm0, %v1293_v28  ;;  %619 = vmatpush.msra.mxu2 %v1280_v25 }
  0x3c   : > { %540 = vmatpush.msrb.mxu1 %v1392_v44  ;;  %634 = vmatpush.msrb.mxu3 %v1205_v10 }
  0x3d   : > { %662 = vmatpush.msrb.mxu0 %v1478_v55  ;;  %991 = vmatmul.msk.f32.gmra.mxu2 %vm340_vm0, %v1293_v28  ;;  %v841_v28 = vld [vmem:[%s1704_s5 + $0x18] sm:$0xff] }
  0x3e   : > { %541 = vmatpush.msrb.mxu1 %v1414_v48  ;;  %635 = vmatpush.msrb.mxu3 %v1220_v13 }
  0x3f   : > { %663 = vmatpush.msrb.mxu0 %v1488_v56  ;;  %620 = vmatpush.msra.mxu2 %v1298_v29 }
  0x40   : > { %542 = vmatpush.msrb.mxu1 %v1425_v49  ;;  %636 = vmatpush.msrb.mxu3 %v1238_v17 }
  0x41   : > { %664 = vmatpush.msrb.mxu0 %v1498_v57  ;;  %621 = vmatpush.msra.mxu2 %v1317_v32 }
  0x42   : > { %543 = vmatpush.msrb.mxu1 %v1432_v50  ;;  %637 = vmatpush.msrb.mxu3 %v1250_v19 }
  0x43   : > { %665 = vmatpush.msrb.mxu0 %v1507_v58  ;;  %622 = vmatpush.msra.mxu2 %v1337_v35 }
  0x44   : > { %544 = vmatpush.msrb.mxu1 %v1441_v51  ;;  %638 = vmatpush.msrb.mxu3 %v1273_v24 }
  0x45   : > { %986 = vmatmul.msk.f32.gmra.mxu0 %vm340_vm0, %v1373_v41  ;;  %992 = vmatmul.msk.f32.gmra.mxu2 %vm340_vm0, %v1373_v41  ;;  %v1653_v41 = vperm.slane %v1588_v60, 2 }
  0x46   : > { %545 = vmatpush.msrb.mxu1 %v1451_v52  ;;  %639 = vmatpush.msrb.mxu3 %v1285_v26 }
  0x47   : > { %623 = vmatpush.msra.mxu2 %v1356_v38  ;;  %858 = vmatpush.msra.mxu0 %v853_v62 }
  0x48   : > { %546 = vmatpush.msrb.mxu1 %v1460_v53  ;;  %640 = vmatpush.msrb.mxu3 %v1303_v30 }
  0x49   : > { %624 = vmatpush.msra.mxu2 %v1378_v42  ;;  %859 = vmatpush.msra.mxu0 %v852_v63 }
  0x4a   : > { %547 = vmatpush.msrb.mxu1 %v1469_v54  ;;  %641 = vmatpush.msrb.mxu3 %v1322_v33 }
  0x4b   : > { %625 = vmatpush.msra.mxu2 %v1397_v45 }
  0x4c   : > { %548 = vmatpush.msrb.mxu1 %v1478_v55  ;;  %642 = vmatpush.msrb.mxu3 %v1342_v36 }
  0x4d   : > { %745 = vmatpush.msrb.mxu2 %v1159_v2 }
  0x4e   : > { %549 = vmatpush.msrb.mxu1 %v1488_v56  ;;  %643 = vmatpush.msrb.mxu3 %v1361_v39 }
  0x4f   : > { %746 = vmatpush.msrb.mxu2 %v1171_v4 }
  0x50   : > { %550 = vmatpush.msrb.mxu1 %v1498_v57  ;;  %644 = vmatpush.msrb.mxu3 %v1383_v43 }
  0x51   : > { %747 = vmatpush.msrb.mxu2 %v1181_v6 }
  0x52   : > { %551 = vmatpush.msrb.mxu1 %v1507_v58  ;;  %645 = vmatpush.msrb.mxu3 %v1402_v46 }
  0x53   : > { %552 = vmatmul.f32.vlgmr.msrb.gmra.mxu1 %v1409_v47  ;;  %748 = vmatpush.msrb.mxu2 %v1193_v8  ;;  %v851_v8 = vld [vmem:[%s1704_s5 + $0x68] sm:$0xff] }
  0x54   : > { %725 = vmatpush.msra.mxu1 %v1154_v1  ;;  %765 = vmatpush.msra.mxu3 %v1312_v31 }
  0x55   : > { %749 = vmatpush.msrb.mxu2 %v1205_v10  ;;  %860 = vmatpush.msra.mxu0 %v851_v8 }
  0x56   : > { %726 = vmatpush.msra.mxu1 %v1164_v3  ;;  %766 = vmatpush.msra.mxu3 %v1332_v34  ;;  %v1600_v3 = vperm.slane %v1588_v60, 0  ;;  %v838_v34 = vld [vmem:[%s1704_s5] sm:$0xff] }
  0x57   : > { %750 = vmatpush.msrb.mxu2 %v1220_v13 }
  0x58   : > { %727 = vmatpush.msra.mxu1 %v1176_v5  ;;  %767 = vmatpush.msra.mxu3 %v1351_v37 }
  0x59   : > { %751 = vmatpush.msrb.mxu2 %v1238_v17 }
  0x5a   : > { %728 = vmatpush.msra.mxu1 %v1188_v7  ;;  %768 = vmatpush.msra.mxu3 %v1370_v40 }
  0x5b   : > { %752 = vmatpush.msrb.mxu2 %v1250_v19  ;;  %v846_v19 = vld [vmem:[%s1704_s5 + $0x40] sm:$0xff] }
  0x5c   : > { %729 = vmatpush.msra.mxu1 %v1200_v9  ;;  %769 = vmatpush.msra.mxu3 %v1392_v44 }
  0x5d   : > { %753 = vmatpush.msrb.mxu2 %v1273_v24 }
  0x5e   : > { %730 = vmatpush.msra.mxu1 %v1215_v12  ;;  %770 = vmatpush.msra.mxu3 %v1414_v48  ;;  %v850_v12 = vld [vmem:[%s1704_s5 + $0x60] sm:$0xff] }
  0x5f   : > { %754 = vmatpush.msrb.mxu2 %v1285_v26  ;;  %861 = vmatpush.msra.mxu0 %v850_v12  ;;  %v843_v26 = vld [vmem:[%s1704_s5 + $0x28] sm:$0xff] }
  0x60   : > { %731 = vmatpush.msra.mxu1 %v1233_v16  ;;  %771 = vmatpush.msra.mxu3 %v1425_v49  ;;  %v848_v16 = vld [vmem:[%s1704_s5 + $0x50] sm:$0xff] }
  0x61   : > { %755 = vmatpush.msrb.mxu2 %v1303_v30  ;;  %862 = vmatpush.msra.mxu0 %v849_v14  ;;  %v839_v30 = vld [vmem:[%s1704_s5 + $0x8] sm:$0xff] }
  0x62   : > { %732 = vmatpush.msra.mxu1 %v1245_v18  ;;  %772 = vmatpush.msra.mxu3 %v1432_v50  ;;  %v847_v18 = vld [vmem:[%s1704_s5 + $0x48] sm:$0xff] }
  0x63   : > { %756 = vmatpush.msrb.mxu2 %v1322_v33  ;;  %863 = vmatpush.msra.mxu0 %v848_v16 }
  0x64   : > { %733 = vmatpush.msra.mxu1 %v1268_v23  ;;  %773 = vmatpush.msra.mxu3 %v1441_v51 }
  0x65   : > { %757 = vmatpush.msrb.mxu2 %v1342_v36  ;;  %864 = vmatpush.msra.mxu0 %v847_v18 }
  0x66   : > { %734 = vmatpush.msra.mxu1 %v1280_v25  ;;  %774 = vmatpush.msra.mxu3 %v1451_v52 }
  0x67   : > { %758 = vmatpush.msrb.mxu2 %v1361_v39  ;;  %865 = vmatpush.msra.mxu0 %v846_v19 }
  0x68   : > { %735 = vmatpush.msra.mxu1 %v1298_v29  ;;  %775 = vmatpush.msra.mxu3 %v1460_v53  ;;  %v840_v29 = vld [vmem:[%s1704_s5 + $0x10] sm:$0xff] }
  0x69   : > { %759 = vmatpush.msrb.mxu2 %v1383_v43  ;;  %866 = vmatpush.msra.mxu0 %v845_v21 }
  0x6a   : > { %736 = vmatpush.msra.mxu1 %v1317_v32  ;;  %776 = vmatpush.msra.mxu3 %v1469_v54 }
  0x6b   : > { %760 = vmatpush.msrb.mxu2 %v1402_v46  ;;  %867 = vmatpush.msra.mxu0 %v844_v22 }
  0x6c   : > { %737 = vmatpush.msra.mxu1 %v1337_v35  ;;  %777 = vmatpush.msra.mxu3 %v1478_v55  ;;  %v1650_v35 = vld [vmem:[%s1703_s4] ss:$0 sm:$0xff] }
  0x6d   : > { %868 = vmatpush.msra.mxu0 %v843_v26 }
  0x6e   : > { %738 = vmatpush.msra.mxu1 %v1356_v38  ;;  %778 = vmatpush.msra.mxu3 %v1488_v56 }
  0x6f   : > { %869 = vmatpush.msra.mxu0 %v842_v27 }
  0x70   : > { %739 = vmatpush.msra.mxu1 %v1378_v42  ;;  %779 = vmatpush.msra.mxu3 %v1498_v57 }
  0x71   : > { %870 = vmatpush.msra.mxu0 %v841_v28 }
  0x72   : > { %740 = vmatpush.msra.mxu1 %v1397_v45  ;;  %780 = vmatpush.msra.mxu3 %v1507_v58 }
  0x73   : > { %871 = vmatpush.msra.mxu0 %v840_v29 }
  0x75   : > { %872 = vmatpush.msra.mxu0 %v839_v30 }
  0x77   : > { %873 = vmatpush.msra.mxu0 %v838_v34 }
  0x9c   : > { %v367_v5 = vpop.f32.mrf.mxu0 }
  0x9d   : > { %v368_v9 = vadd.f32 %v367_v5, %v1600_v3 }
  0x9e   : > { %v393_v59 = vpop.f32.mrf.mxu2 }
  0x9f   : > { %v394_v2 = vadd.f32 %v393_v59, %v335_v61 }
  0xa6   : > { %v396_v0 = vpop.f32.mrf.mxu2 }
  0xa7   : > { %v1597_v1 = vadd.f32 %v396_v0, %v335_v61 }
  0xae   : > { %v399_v7 = vpop.f32.mrf.mxu2 }
  0xaf   : > { %v1606_v10 = vadd.f32 %v399_v7, %v335_v61 }
  0xb0   : > { %v533_v4 = vpop.f32.mrf.mxu1 }
  0xb1   : > { %v576_v6 = vadd.f32 %v533_v4, %v394_v2 }
  0xb3   : > { %v994_v11 = vmul.f32 -1.442695, %v576_v6 }
  0xb5   : > { %1028 = vpow2.f32 %v994_v11  ;;  %v1672_v11 = vld [vmem:[%s1705_s6] ss:$0 sm:$0xff] }
  0xb6   : > { %v513_v13 = vpop.f32.mrf.mxu3 }
  0xb7   : > { %v556_v15 = vadd.f32 %v513_v13, %v368_v9 }
  0xb8   : > { %v419_v43 = vpop.f32.mrf.mxu2  ;;  %v370_v2 = vpop.f32.mrf.mxu0 }
  0xb9   : > { %v993_v17 = vmul.f32 -1.442695, %v556_v15  ;;  %v420_v50 = vadd.f32 %v419_v43, %v1653_v41  ;;  %v371_v7 = vadd.f32 %v370_v2, %v1600_v3 }
  0xbb   : > { %1030 = vpow2.f32 %v993_v17  ;;  %v1029_v20 = vpop.eup %1028 }
  0xbc   : > { %v580_v24 = vadd.f32 1.0, %v1029_v20 }
  0xbe   : > { %vm586_vm5 = vweird.f32 %v580_v24  ;;  %v592_v55 = vand.u32 2147483648, %v580_v24  ;;  %v590_v57 = vand.u32 2147483647, %v580_v24 }
  0xc0   : > { %v593_v58 = vor.u32 1.1754944e-38, %v592_v55  ;;  %vm591_vm8 = vcmp.eq.f32.partialorder %v590_v57, 8.507059e+37  ;;  %v422_v4 = vpop.f32.mrf.mxu2 }
  0xc1   : > { %v1031_v23 = vpop.eup %1030 }
  0xc2   : > { %v560_v25 = vadd.f32 1.0, %v1031_v23  ;;  %v1664_v5 = vpop.f32.mrf.mxu0 }
  0xc4   : > { %1032 = vrcp.f32 %v560_v25  ;;  %v572_v38 = vand.u32 2147483648, %v560_v25  ;;  %v570_v40 = vand.u32 2147483647, %v560_v25  ;;  %vm566_vm2 = vweird.f32 %v560_v25 }
  0xc5   : > { %1034 = vrcp.f32 %v580_v24 }
  0xc6   : > { %v573_v48 = vor.u32 1.1754944e-38, %v572_v38  ;;  %vm571_vm4 = vcmp.eq.f32.partialorder %v570_v40, 8.507059e+37 }
  0xc8   : > { %v1666_v6 = vpop.f32.mrf.mxu2 }
  0xca   : > { %v1033_v31 = vpop.eup %1032 }
  0xcb   : > { %v1035_v32 = vpop.eup %1034  ;;  %v562_v33 = vmul.f32 %v1033_v31, %v560_v25  ;;  %vm567_vm1 = vweird.f32 %v1033_v31 }
  0xcc   : > { %v582_v37 = vmul.f32 %v1035_v32, %v580_v24  ;;  %vm568_vm3 = vmor %vm566_vm2, %vm567_vm1  ;;  %vm587_vm6 = vweird.f32 %v1035_v32 }
  0xcd   : > { %v563_v36 = vsub.f32 1.0, %v562_v33  ;;  %vm588_vm7 = vmor %vm586_vm5, %vm587_vm6 }
  0xce   : > { %v583_v46 = vsub.f32 1.0, %v582_v37 }
  0xcf   : > { %v564_v39 = vmul.f32 %v1033_v31, %v563_v36  ;;  %v423_v36 = vadd.f32 %v422_v4, %v1653_v41 }
  0xd0   : > { %v553_v42 = vpop.f32.mrf.mxu1  ;;  %v584_v53 = vmul.f32 %v1035_v32, %v583_v46 }
  0xd1   : > { %v565_v44 = vadd.f32 %v1033_v31, %v564_v39  ;;  %v596_v45 = vadd.f32 %v1650_v35, %v553_v42 }
  0xd2   : > { %v585_v56 = vadd.f32 %v1035_v32, %v584_v53 }
  0xd3   : > { %v569_v49 = vsel %vm568_vm3, %v1033_v31, %v565_v44 }
  0xd4   : > { %v574_v51 = vsel %vm571_vm4, %v573_v48, %v569_v49  ;;  %v589_v59 = vsel %vm588_vm7, %v1035_v32, %v585_v56 }
  0xd5   : > { %v597_v52 = vmul.f32 %v596_v45, %v574_v51  ;;  %v594_v62 = vsel %vm591_vm8, %v593_v58, %v589_v59 }
  0xd7   : > { %v598_v54 = vadd.f32 %v597_v52, %v420_v50  ;;  %v374_v52 = vadd.f32 %v1664_v5, %v1600_v3 }
  0xd9   : > { %1036 = vtanh.f32 %v598_v54 }
  0xdf   : > { %v1037_v60 = vpop.eup %1036 }
  0xe0   : > { %v600_v61 = vsub.f32 %v1409_v47, %v1037_v60 }
  0xe2   : > { %v601_v63 = vmul.f32 %v600_v61, %v594_v62 }
  0xe4   : > { %v1658_v0 = vadd.f32 %v1037_v60, %v601_v63 }
  0xe6   : > { %626 = vmatmul.f32.vlgmr.msra.gmra.mxu2 %v1658_v0  ;;  %646 = vmatmul.f32.vlgmr.msrb.gmra.mxu3 %v1658_v0 }
  0xe7   : > { %666 = vmatmul.f32.vlgmr.msrb.gmra.mxu0 %v1658_v0 }
  0xef   : > { %874 = vmatmul.f32.vlgmr.msra.gmra.mxu0 %v1658_v0 }
 0x164   : > { %v667_v47 = vpop.f32.mrf.mxu0 }
 0x165   : > { %v710_v32 = vadd.f32 %v1650_v35, %v667_v47 }
 0x169   : > { %v627_v8 = vpop.f32.mrf.mxu2  ;;  %v647_v9 = vpop.f32.mrf.mxu3 }
 0x16a   : > { %v670_v12 = vadd.f32 %v627_v8, %v371_v7  ;;  %v690_v13 = vadd.f32 %v647_v9, %v1597_v1 }
 0x16c   : > { %v995_v14 = vmul.f32 -1.442695, %v670_v12  ;;  %v996_v15 = vmul.f32 -1.442695, %v690_v13  ;;  %v875_v16 = vpop.f32.mrf.mxu0 }
 0x16d   : > { %v876_v17 = vadd.f32 %v1672_v11, %v875_v16 }
 0x16e   : > { %1038 = vpow2.f32 %v995_v14 }
 0x16f   : > { %1040 = vpow2.f32 %v996_v15  ;;  %884 = vst [vmem:[%s1149_s12] sm:$0xff] %v876_v17 }
 0x174   : > { %v1039_v18 = vpop.eup %1038 }
 0x175   : > { %v1041_v19 = vpop.eup %1040  ;;  %v674_v20 = vadd.f32 1.0, %v1039_v18  ;;  %v426_v18 = vadd.f32 %v1666_v6, %v1653_v41 }
 0x176   : > { %v694_v21 = vadd.f32 1.0, %v1041_v19 }
 0x177   : > { %1042 = vrcp.f32 %v674_v20  ;;  %v686_v26 = vand.u32 2147483648, %v674_v20  ;;  %v684_v28 = vand.u32 2147483647, %v674_v20  ;;  %vm680_vm10 = vweird.f32 %v674_v20 }
 0x178   : > { %1044 = vrcp.f32 %v694_v21  ;;  %v706_v42 = vand.u32 2147483648, %v694_v21  ;;  %vm700_vm14 = vweird.f32 %v694_v21  ;;  %v704_v43 = vand.u32 2147483647, %v694_v21 }
 0x179   : > { %v687_v30 = vor.u32 1.1754944e-38, %v686_v26  ;;  %vm685_vm12 = vcmp.eq.f32.partialorder %v684_v28, 8.507059e+37 }
 0x17a   : > { %v707_v46 = vor.u32 1.1754944e-38, %v706_v42  ;;  %vm705_vm0 = vcmp.eq.f32.partialorder %v704_v43, 8.507059e+37 }
 0x17d   : > { %v1043_v22 = vpop.eup %1042 }
 0x17e   : > { %v1045_v23 = vpop.eup %1044  ;;  %v676_v24 = vmul.f32 %v1043_v22, %v674_v20  ;;  %vm681_vm9 = vweird.f32 %v1043_v22 }
 0x17f   : > { %v696_v1 = vmul.f32 %v1045_v23, %v694_v21  ;;  %vm682_vm11 = vmor %vm680_vm10, %vm681_vm9  ;;  %vm701_vm13 = vweird.f32 %v1045_v23 }
 0x180   : > { %v677_v25 = vsub.f32 1.0, %v676_v24  ;;  %vm702_vm15 = vmor %vm700_vm14, %vm701_vm13 }
 0x181   : > { %v697_v31 = vsub.f32 1.0, %v696_v1 }
 0x182   : > { %v678_v27 = vmul.f32 %v1043_v22, %v677_v25 }
 0x183   : > { %v698_v38 = vmul.f32 %v1045_v23, %v697_v31 }
 0x184   : > { %v679_v29 = vadd.f32 %v1043_v22, %v678_v27 }
 0x185   : > { %v699_v40 = vadd.f32 %v1045_v23, %v698_v38 }
 0x186   : > { %v683_v33 = vsel %vm682_vm11, %v1043_v22, %v679_v29 }
 0x187   : > { %v688_v34 = vsel %vm685_vm12, %v687_v30, %v683_v33  ;;  %v703_v44 = vsel %vm702_vm15, %v1045_v23, %v699_v40 }
 0x188   : > { %v711_v37 = vmul.f32 %v710_v32, %v688_v34  ;;  %v708_v49 = vsel %vm705_vm0, %v707_v46, %v703_v44 }
 0x18a   : > { %v712_v39 = vadd.f32 %v711_v37, %v423_v36 }
 0x18c   : > { %1046 = vtanh.f32 %v712_v39 }
 0x192   : > { %v1047_v45 = vpop.eup %1046 }
 0x193   : > { %v714_v48 = vsub.f32 %v1658_v0, %v1047_v45 }
 0x195   : > { %v715_v50 = vmul.f32 %v714_v48, %v708_v49 }
 0x197   : > { %v716_v51 = vadd.f32 %v1047_v45, %v715_v50 }
 0x199   : > { %741 = vmatmul.f32.vlgmr.msra.gmra.mxu1 %v716_v51  ;;  %761 = vmatmul.f32.vlgmr.msrb.gmra.mxu2 %v716_v51 }
 0x19a   : > { %781 = vmatmul.f32.vlgmr.msra.gmra.mxu3 %v716_v51  ;;  %877 = vmatmul.f32.gmra.mxu0 %v716_v51 }
 0x216   : > { %v742_v53 = vpop.f32.mrf.mxu1 }
 0x217   : > { %v785_v54 = vadd.f32 %v742_v53, %v374_v52  ;;  %v878_v55 = vpop.f32.mrf.mxu0 }
 0x218   : > { %v879_v56 = vadd.f32 %v1672_v11, %v878_v55 }
 0x219   : > { %v997_v57 = vmul.f32 -1.442695, %v785_v54 }
 0x21a   : > { %885 = vst [vmem:[%s1149_s12 + $0x8] sm:$0xff] %v879_v56 }
 0x21b   : > { %1048 = vpow2.f32 %v997_v57 }
 0x21c   : > { %v762_v58 = vpop.f32.mrf.mxu2 }
 0x21d   : > { %v805_v59 = vadd.f32 %v762_v58, %v1606_v10  ;;  %v782_v9 = vpop.f32.mrf.mxu3 }
 0x21e   : > { %v825_v15 = vadd.f32 %v1650_v35, %v782_v9 }
 0x21f   : > { %v998_v60 = vmul.f32 -1.442695, %v805_v59 }
 0x221   : > { %v1049_v61 = vpop.eup %1048  ;;  %1050 = vpow2.f32 %v998_v60 }
 0x222   : > { %v789_v62 = vadd.f32 1.0, %v1049_v61 }
 0x224   : > { %1052 = vrcp.f32 %v789_v62  ;;  %v801_v5 = vand.u32 2147483648, %v789_v62  ;;  %v799_v7 = vand.u32 2147483647, %v789_v62  ;;  %vm795_vm2 = vweird.f32 %v789_v62 }
 0x226   : > { %v802_v13 = vor.u32 1.1754944e-38, %v801_v5  ;;  %vm800_vm4 = vcmp.eq.f32.partialorder %v799_v7, 8.507059e+37 }
 0x227   : > { %v1051_v63 = vpop.eup %1050 }
 0x228   : > { %v809_v0 = vadd.f32 1.0, %v1051_v63 }
 0x22a   : > { %v1053_v2 = vpop.eup %1052  ;;  %1054 = vrcp.f32 %v809_v0  ;;  %v821_v23 = vand.u32 2147483648, %v809_v0  ;;  %vm815_vm6 = vweird.f32 %v809_v0  ;;  %v819_v24 = vand.u32 2147483647, %v809_v0 }
 0x22b   : > { %v791_v3 = vmul.f32 %v1053_v2, %v789_v62  ;;  %vm796_vm1 = vweird.f32 %v1053_v2 }
 0x22c   : > { %vm797_vm3 = vmor %vm795_vm2, %vm796_vm1  ;;  %v822_v1 = vor.u32 1.1754944e-38, %v821_v23  ;;  %vm820_vm8 = vcmp.eq.f32.partialorder %v819_v24, 8.507059e+37 }
 0x22d   : > { %v792_v4 = vsub.f32 1.0, %v791_v3 }
 0x22f   : > { %v793_v47 = vmul.f32 %v1053_v2, %v792_v4 }
 0x230   : > { %v1055_v8 = vpop.eup %1054 }
 0x231   : > { %v794_v12 = vadd.f32 %v1053_v2, %v793_v47  ;;  %v811_v10 = vmul.f32 %v1055_v8, %v809_v0  ;;  %vm816_vm5 = vweird.f32 %v1055_v8 }
 0x232   : > { %vm817_vm7 = vmor %vm815_vm6, %vm816_vm5 }
 0x233   : > { %v798_v14 = vsel %vm797_vm3, %v1053_v2, %v794_v12  ;;  %v812_v16 = vsub.f32 1.0, %v811_v10 }
 0x234   : > { %v803_v17 = vsel %vm800_vm4, %v802_v13, %v798_v14 }
 0x235   : > { %v826_v19 = vmul.f32 %v825_v15, %v803_v17  ;;  %v813_v20 = vmul.f32 %v1055_v8, %v812_v16 }
 0x237   : > { %v827_v21 = vadd.f32 %v826_v19, %v426_v18  ;;  %v814_v22 = vadd.f32 %v1055_v8, %v813_v20 }
 0x239   : > { %1056 = vtanh.f32 %v827_v21  ;;  %v818_v25 = vsel %vm817_vm7, %v1055_v8, %v814_v22 }
 0x23a   : > { %v823_v27 = vsel %vm820_vm8, %v822_v1, %v818_v25 }
 0x23f   : > { %v1057_v26 = vpop.eup %1056 }
 0x240   : > { %v829_v35 = vsub.f32 %v716_v51, %v1057_v26 }
 0x242   : > { %v830_v28 = vmul.f32 %v829_v35, %v823_v27 }
 0x244   : > { %v831_v29 = vadd.f32 %v1057_v26, %v830_v28 }
 0x246   : > { %834 = vst [vmem:[#allocation4] sm:$0xff] %v831_v29  ;;  %880 = vmatmul.f32.gmra.mxu0 %v831_v29 }
 0x2c3   : > { %v881_v41 = vpop.f32.mrf.mxu0 }
 0x2c4   : > { %v882_v6 = vadd.f32 %v1672_v11, %v881_v41 }
 0x2c6   : > { %886 = vst [vmem:[%s1149_s12 + $0x10] sm:$0xff] %v882_v6 }
 0x2c7 PF: > { %s17_s26 = sadd.s32 1, %s1080_s26   ;;  %s1707_s24 = smov %s1076_s25 }
 0x2c8   : > { %p14_p6 = scmp.ge.s32.totalorder %s17_s26, 5   ;;  %s1708_s25 = smov %s1710_s27 }
 0x2ca   :  { %16 = sbr.rel (!%p14_p6) target bundleno = 2 (0x2), region = 87 }

</bundles_post_ra>
